<compile_context>
chip_gen: v7x
topology: tpu7x:2x2x1
jax: 0.10.0
libtpu: 0.0.40
codegen_flags: <defaults>
</compile_context>

<pallas_src>
import jax
import jax.numpy as jnp
from jax.experimental import pallas as pl
from jax.experimental.pallas import tpu as pltpu


def _round_up(x, m):
    return (x + m - 1) // m * m


def _pick_tile_b(b_pad):
    # b_pad is always a multiple of 128.
    #  - If only one 128-row tile exists, use it.
    #  - Otherwise guarantee at least 2 grid steps (so dimension_semantics=
    #    ("parallel",) actually has work to split across v7x's two TensorCores)
    #    while preferring large tiles (cap 4096) to amortize per-step pipeline
    #    overhead on single-TC v5e/v6e.
    if b_pad <= 128:
        return b_pad
    tile = min(4096, b_pad // 2)
    tile = max(128, (tile // 128) * 128)
    while b_pad % tile != 0:
        tile -= 128
    return tile


def gmf_kernel(uidx_ref, iidx_ref, ut_ref, it_ref, w_ref, b_ref, out_ref):
    # uidx_ref, iidx_ref : (1, TB) int32  user / item indices for this batch tile
    # ut_ref             : (D, U)  f32    user embedding table, transposed, VMEM-resident
    # it_ref             : (D, I)  f32    item embedding table, transposed, VMEM-resident
    # w_ref              : (1, D)  f32    affine_output weight row (== torch weight)
    # b_ref              : (1, 1)  f32    affine_output bias (SMEM scalar)
    # out_ref            : (1, TB) f32    sigmoid(w . (u * i) + b), lane-dense
    n_users = ut_ref.shape[1]
    n_items = it_ref.shape[1]
    tb = uidx_ref.shape[1]

    uidx = uidx_ref[...]                                     # (1, TB) int32
    iidx = iidx_ref[...]                                     # (1, TB) int32

    # One-hot row selectors with batch on lanes: (U, TB) / (I, TB).
    # NOTE: out-of-range indices silently select a zero embedding (torch would
    # raise); benign for valid inputs.
    u_sel = (jax.lax.broadcasted_iota(jnp.int32, (n_users, tb), 0) == uidx
             ).astype(jnp.float32)
    i_sel = (jax.lax.broadcasted_iota(jnp.int32, (n_items, tb), 0) == iidx
             ).astype(jnp.float32)

    # Fused gather on the MXU: (D, U) @ (U, TB) -> (D, TB).
    u_emb = jnp.dot(ut_ref[...], u_sel, preferred_element_type=jnp.float32)
    i_emb = jnp.dot(it_ref[...], i_sel, preferred_element_type=jnp.float32)

    prod = u_emb * i_emb                                     # (D, TB)  VPU
    # Linear(D -> 1) as an MXU matvec: (1, D) @ (D, TB) -> (1, TB).
    logits = jnp.dot(w_ref[...], prod, preferred_element_type=jnp.float32)
    out_ref[...] = jax.nn.sigmoid(logits + b_ref[0, 0]).astype(out_ref.dtype)


def gmf_forward(user_table_t, item_table_t, w_row, b, user_indices, item_indices):
    """Fully fused GMF forward (gather + mul + Linear(D->1) + sigmoid).

    user_table_t : (D, num_users) f32   -- pre-transposed (one-time init cost)
    item_table_t : (D, num_items) f32   -- pre-transposed (one-time init cost)
    w_row        : (1, D)         f32   -- torch affine_output.weight
    b            : (1, 1)         f32
    user_indices / item_indices : (B,)  integer
    returns      : (B, 1) f32
    """
    d, n_users = user_table_t.shape
    d2, n_items = item_table_t.shape
    assert d == d2
    assert w_row.shape == (1, d)
    batch = int(user_indices.shape[0])

    # TODO(synk): for embedding tables too large to keep resident in VMEM, switch
    # to memory_space=pl.ANY tables + scalar-prefetched indices and a
    # double-buffered make_async_copy row gather (the one-hot gather is
    # O(table_size) per batch tile and only viable for tiny catalogs).

    b_pad = _round_up(max(batch, 1), 128)
    tile_b = _pick_tile_b(b_pad)
    grid = (b_pad // tile_b,)

    # Pad indices with 0 (a valid row); padded outputs are sliced off below.
    uidx = jnp.pad(user_indices.astype(jnp.int32), (0, b_pad - batch)).reshape(1, b_pad)
    iidx = jnp.pad(item_indices.astype(jnp.int32), (0, b_pad - batch)).reshape(1, b_pad)

    out = pl.pallas_call(
        gmf_kernel,
        out_shape=jax.ShapeDtypeStruct((1, b_pad), jnp.float32),
        grid_spec=pltpu.PrefetchScalarGridSpec(
            num_scalar_prefetch=0,
            grid=grid,
            in_specs=[
                pl.BlockSpec((1, tile_b), lambda i: (0, i)),          # user idx tile
                pl.BlockSpec((1, tile_b), lambda i: (0, i)),          # item idx tile
                pl.BlockSpec(memory_space=pltpu.MemorySpace.VMEM),    # user table, resident (1 copy)
                pl.BlockSpec(memory_space=pltpu.MemorySpace.VMEM),    # item table, resident (1 copy)
                pl.BlockSpec(memory_space=pltpu.MemorySpace.VMEM),    # weight row, resident (1 copy)
                pl.BlockSpec(memory_space=pltpu.MemorySpace.SMEM),    # bias scalar
            ],
            out_specs=pl.BlockSpec((1, tile_b), lambda i: (0, i)),    # lane-dense output row
        ),
        compiler_params=pltpu.CompilerParams(
            dimension_semantics=("parallel",),
            vmem_limit_bytes=32 * 1024 * 1024,   # explicit headroom (v5e default is 16 MiB)
        ),
    )(
        uidx,
        iidx,
        user_table_t.astype(jnp.float32),
        item_table_t.astype(jnp.float32),
        w_row.astype(jnp.float32),
        b.astype(jnp.float32),
    )

    return out[0, :batch].reshape(batch, 1)


def make_params(key, num_users, num_items, latent_dim):
    """Deterministic parameter init matching the torch module's shapes.

    nn.Embedding default: N(0, 1).  nn.Linear default: U(-1/sqrt(fan_in), 1/sqrt(fan_in)).
    Returns row-major parameters (torch layout).
    """
    k_u, k_i, k_w, k_b = jax.random.split(key, 4)
    user_table = jax.random.normal(k_u, (num_users, latent_dim), jnp.float32)
    item_table = jax.random.normal(k_i, (num_items, latent_dim), jnp.float32)
    bound = 1.0 / jnp.sqrt(jnp.float32(latent_dim))
    w = jax.random.uniform(k_w, (latent_dim, 1), jnp.float32, -bound, bound)
    b = jax.random.uniform(k_b, (1, 1), jnp.float32, -bound, bound)
    return user_table, item_table, w, b


if __name__ == "__main__":
    # config = {'num_users': 32, 'num_items': 48, 'latent_dim': 32, 'use_cuda': False}
    num_users, num_items, latent_dim = 32, 48, 32
    batch = 16

    key = jax.random.PRNGKey(0)
    k_params, k_uid, k_iid = jax.random.split(key, 3)

    user_table, item_table, w, b = make_params(k_params, num_users, num_items, latent_dim)

    # One-time layout preparation (amortized over all forwards, not paid per call):
    # tables as (D, N) with rows on lanes, affine weight as a (1, D) row.
    user_table_t = jnp.asarray(user_table.T)       # (D, num_users)
    item_table_t = jnp.asarray(item_table.T)       # (D, num_items)
    w_row = jnp.asarray(w.T)                       # (1, D)

    user_indices = jax.random.randint(k_uid, (batch,), 0, num_users, jnp.int32)
    item_indices = jax.random.randint(k_iid, (batch,), 0, num_items, jnp.int32)

    rating = gmf_forward(user_table_t, item_table_t, w_row, b,
                         user_indices, item_indices)
    rating = jax.block_until_ready(rating)

    # Reference check in plain JAX (same math, torch layout).
    u_emb = jnp.take(user_table, user_indices, axis=0)
    i_emb = jnp.take(item_table, item_indices, axis=0)
    ref = jax.nn.sigmoid((u_emb * i_emb) @ w + b)
    assert rating.shape == (batch, 1)
    assert jnp.allclose(rating, ref, atol=1e-5, rtol=1e-5)

    print("KERNEL_OK")
</pallas_src>

<mosaic_0001>
module attributes {stable_mosaic.version = 11 : i64} {
  func.func @gmf_kernel(%arg0: i32, %arg1: memref<1x128xi32, #tpu.memory_space<vmem>>, %arg2: memref<1x128xi32, #tpu.memory_space<vmem>>, %arg3: memref<32x32xf32, #tpu.memory_space<vmem>>, %arg4: memref<32x48xf32, #tpu.memory_space<vmem>>, %arg5: memref<1x32xf32, #tpu.memory_space<vmem>>, %arg6: memref<1x1xf32, #tpu.memory_space<smem>>, %arg7: memref<1x128xf32, #tpu.memory_space<vmem>>) attributes {dimension_semantics = [#tpu.dimension_semantics<parallel>], iteration_bounds = array<i64: 1>, scalar_prefetch = 0 : i64, scratch_operands = 0 : i64, tpu.core_type = #tpu.core_type<tc>, window_params = [{transform_indices = @transform_0, window_bounds = array<i64: 1, 128>}, {transform_indices = @transform_1, window_bounds = array<i64: 1, 128>}, {pipeline_mode = #tpu.pipeline_mode<synchronous>, transform_indices = @transform_2, window_bounds = array<i64: 32, 32>}, {pipeline_mode = #tpu.pipeline_mode<synchronous>, transform_indices = @transform_3, window_bounds = array<i64: 32, 48>}, {pipeline_mode = #tpu.pipeline_mode<synchronous>, transform_indices = @transform_4, window_bounds = array<i64: 1, 32>}, {transform_indices = @transform_5, window_bounds = array<i64: 1, 1>}, {transform_indices = @transform_6, window_bounds = array<i64: 1, 128>}]} {
    %c0 = arith.constant 0 : index
    %c0_0 = arith.constant 0 : index
    %0 = vector.load %arg1[%c0, %c0_0] : memref<1x128xi32, #tpu.memory_space<vmem>>, vector<1x128xi32>
    %c0_1 = arith.constant 0 : index
    %c0_2 = arith.constant 0 : index
    %1 = vector.load %arg2[%c0_1, %c0_2] : memref<1x128xi32, #tpu.memory_space<vmem>>, vector<1x128xi32>
    %2 = tpu.iota {dimensions = array<i32: 0>} : vector<32x128xi32>
    %3 = vector.broadcast %0 : vector<1x128xi32> to vector<32x128xi32>
    %4 = arith.cmpi eq, %2, %3 : vector<32x128xi32>
    %5 = arith.extui %4 : vector<32x128xi1> to vector<32x128xi32>
    %6 = arith.sitofp %5 : vector<32x128xi32> to vector<32x128xf32>
    %7 = tpu.iota {dimensions = array<i32: 0>} : vector<48x128xi32>
    %8 = vector.broadcast %1 : vector<1x128xi32> to vector<48x128xi32>
    %9 = arith.cmpi eq, %7, %8 : vector<48x128xi32>
    %10 = arith.extui %9 : vector<48x128xi1> to vector<48x128xi32>
    %11 = arith.sitofp %10 : vector<48x128xi32> to vector<48x128xf32>
    %c0_3 = arith.constant 0 : index
    %c0_4 = arith.constant 0 : index
    %12 = vector.load %arg3[%c0_3, %c0_4] : memref<32x32xf32, #tpu.memory_space<vmem>>, vector<32x32xf32>
    %cst = arith.constant dense<0.000000e+00> : vector<32x128xf32>
    %13 = tpu.matmul %12, %6, %cst {dimension_numbers = #tpu.dot_dimension_numbers<[1], [0], [0], [1], [0, 0, 1, 1], [], []>} : vector<32x32xf32>, vector<32x128xf32>, vector<32x128xf32> -> vector<32x128xf32>
    %c0_5 = arith.constant 0 : index
    %c0_6 = arith.constant 0 : index
    %14 = vector.load %arg4[%c0_5, %c0_6] : memref<32x48xf32, #tpu.memory_space<vmem>>, vector<32x48xf32>
    %cst_7 = arith.constant dense<0.000000e+00> : vector<32x128xf32>
    %15 = tpu.matmul %14, %11, %cst_7 {dimension_numbers = #tpu.dot_dimension_numbers<[1], [0], [0], [1], [0, 0, 1, 1], [], []>} : vector<32x48xf32>, vector<48x128xf32>, vector<32x128xf32> -> vector<32x128xf32>
    %16 = arith.mulf %13, %15 : vector<32x128xf32>
    %c0_8 = arith.constant 0 : index
    %c0_9 = arith.constant 0 : index
    %17 = vector.load %arg5[%c0_8, %c0_9] : memref<1x32xf32, #tpu.memory_space<vmem>>, vector<1x32xf32>
    %cst_10 = arith.constant dense<0.000000e+00> : vector<1x128xf32>
    %18 = tpu.matmul %17, %16, %cst_10 {dimension_numbers = #tpu.dot_dimension_numbers<[1], [0], [0], [1], [0, 0, 1, 1], [], []>} : vector<1x32xf32>, vector<32x128xf32>, vector<1x128xf32> -> vector<1x128xf32>
    %c0_11 = arith.constant 0 : index
    %c0_12 = arith.constant 0 : index
    %19 = memref.load %arg6[%c0_11, %c0_12] : memref<1x1xf32, #tpu.memory_space<smem>>
    %20 = vector.broadcast %19 : f32 to vector<1x128xf32>
    %21 = arith.addf %18, %20 : vector<1x128xf32>
    %22 = arith.negf %21 : vector<1x128xf32>
    %23 = math.exp %22 : vector<1x128xf32>
    %cst_13 = arith.constant 1.000000e+00 : f32
    %24 = vector.broadcast %cst_13 : f32 to vector<1x128xf32>
    %25 = arith.addf %24, %23 : vector<1x128xf32>
    %26 = arith.divf %24, %25 : vector<1x128xf32>
    %c0_14 = arith.constant 0 : index
    %c0_15 = arith.constant 0 : index
    %27 = vector.load %arg7[%c0_14, %c0_15] : memref<1x128xf32, #tpu.memory_space<vmem>>, vector<1x128xf32>
    tpu.vector_store %arg7[%c0_14, %c0_15], %26 {strides = array<i32>} : memref<1x128xf32, #tpu.memory_space<vmem>>, vector<1x128xf32>,
    return
  }
  func.func @transform_0(%arg0: i32) -> (i32, i32) {
    %c0_i32 = arith.constant 0 : i32
    %c0_i32_0 = arith.constant 0 : i32
    return %c0_i32, %arg0 : i32, i32
  }
  func.func @transform_1(%arg0: i32) -> (i32, i32) {
    %c0_i32 = arith.constant 0 : i32
    %c0_i32_0 = arith.constant 0 : i32
    return %c0_i32, %arg0 : i32, i32
  }
  func.func @transform_2(%arg0: i32) -> (i32, i32) {
    %c0_i32 = arith.constant 0 : i32
    %c0_i32_0 = arith.constant 0 : i32
    %c0_i32_1 = arith.constant 0 : i32
    return %c0_i32, %c0_i32_0 : i32, i32
  }
  func.func @transform_3(%arg0: i32) -> (i32, i32) {
    %c0_i32 = arith.constant 0 : i32
    %c0_i32_0 = arith.constant 0 : i32
    %c0_i32_1 = arith.constant 0 : i32
    return %c0_i32, %c0_i32_0 : i32, i32
  }
  func.func @transform_4(%arg0: i32) -> (i32, i32) {
    %c0_i32 = arith.constant 0 : i32
    %c0_i32_0 = arith.constant 0 : i32
    %c0_i32_1 = arith.constant 0 : i32
    return %c0_i32, %c0_i32_0 : i32, i32
  }
  func.func @transform_5(%arg0: i32) -> (i32, i32) {
    %c0_i32 = arith.constant 0 : i32
    %c0_i32_0 = arith.constant 0 : i32
    %c0_i32_1 = arith.constant 0 : i32
    return %c0_i32, %c0_i32_0 : i32, i32
  }
  func.func @transform_6(%arg0: i32) -> (i32, i32) {
    %c0_i32 = arith.constant 0 : i32
    %c0_i32_0 = arith.constant 0 : i32
    return %c0_i32, %arg0 : i32, i32
  }
}

</mosaic_0001>

<bundles_post_ra>
// kernel: tpu_custom_call.1
= control target key start
LH: loop header
LB: loop body
LE: loop exit
PB: predicated region body
PF: predicated region fallthrough
CT: control target
= control target key end

     0   :  { %12 = vsyncpa [#allocation4], 0  ;;  %s717_s0 = inlined_call_operand.vmem [shape: s32[1,128], index: 0, kind: input, shape index: {}]   ;;  %s718_s1 = inlined_call_operand.vmem [shape: s32[1,128], index: 1, kind: input, shape index: {}]   ;;  %s719_s2 = inlined_call_operand.hbm [shape: f32[32,32], index: 2, kind: input, shape index: {}]   ;;  %s720_s3 = inlined_call_operand.hbm [shape: f32[32,48], index: 3, kind: input, shape index: {}]   ;;  %s721_s4 = inlined_call_operand.vmem [shape: f32[1,32], index: 4, kind: input, shape index: {}]   ;;  %s722_s5 = inlined_call_operand.<no memory space> [shape: f32[1,1], index: 5, kind: input, shape index: {}]   ;;  %s723_s6 = inlined_call_operand.hbm [shape: f32[1,128], index: 6, kind: output, shape index: {}]  }
   0x1   :  { %13 = vsyncpa [#allocation7], 0 }
   0x2   :  { %14 = vsyncpa [#allocation5], 0  ;;  %s616_s21 = smov [#allocation3]   ;;  %s544_s25 = scalar_lea.hbm %s719_s2, 512 }
   0x3   :  { %s24_s22 = sshll.u32 %s616_s21, 4  ;;  %p545_p0 = scmp.ne.s32.totalorder %s719_s2, %s544_s25  ;;  %s25_s22 = int_to_ptr.vmem [resolvable:$true] %s24_s22 }
   0x4   :  { %p548_p1 = scmp.lt.u32.totalorder %s544_s25, %s719_s2 }
   0x6   :  { %p550_p2 = pnand %p548_p1, %p545_p0 }
   0x8   :  { %553 = shalt.err (!%p550_p2)
}
   0x9   :  { %s554_s30 = scalar_lea.vmem %s25_s22, 512  ;;  %p559_p4 = scmp.lt.s32.totalorder %s25_s22, %s25_s22 }
   0xa   :  { %p555_p3 = scmp.ne.s32.totalorder %s25_s22, %s554_s30  ;;  %p560_p5 = scmp.lt.s32.totalorder %s554_s30, %s554_s30 }
   0xc   :  { %p561_p6 = por %p560_p5, %p559_p4 }
   0xe   :  { %p562_p7 = pnand %p561_p6, %p555_p3 }
  0x10   :  { %565 = shalt.err (!%p562_p7)
}
  0x11   :  { %s617_s7 = smov 128   ;;  %s618_s8 = smov 8  }
  0x12   :  { %30 = dma.hbm_to_vmem [thread:$0]  %s719_s2, 512, %s25_s22, [#allocation4], %s617_s7, %s617_s7, %s618_s8  }
  0x13   :  { %s619_s11 = smov [#allocation6]   ;;  %s566_s15 = scalar_lea.hbm %s720_s3, 512 }
  0x14   :  { %s36_s12 = sshll.u32 %s619_s11, 4  ;;  %p567_p8 = scmp.ne.s32.totalorder %s720_s3, %s566_s15  ;;  %s37_s12 = int_to_ptr.vmem [resolvable:$true] %s36_s12 }
  0x15   :  { %p570_p9 = scmp.lt.u32.totalorder %s566_s15, %s720_s3 }
  0x17   :  { %p572_p10 = pnand %p570_p9, %p567_p8 }
  0x19   :  { %575 = shalt.err (!%p572_p10)
}
  0x1a   :  { %s576_s20 = scalar_lea.vmem %s37_s12, 512  ;;  %p581_p12 = scmp.lt.s32.totalorder %s37_s12, %s37_s12 }
  0x1b   :  { %p577_p11 = scmp.ne.s32.totalorder %s37_s12, %s576_s20  ;;  %p582_p13 = scmp.lt.s32.totalorder %s576_s20, %s576_s20 }
  0x1d   :  { %p583_p0 = por %p582_p13, %p581_p12 }
  0x1f   :  { %p584_p1 = pnand %p583_p0, %p577_p11 }
  0x21   :  { %587 = shalt.err (!%p584_p1)
}
  0x22   :  { %42 = dma.hbm_to_vmem [thread:$0]  %s720_s3, 512, %s37_s12, [#allocation7], %s617_s7, %s617_s7, %s618_s8  }
  0x23   :  { %610 = dma.done.wait [#allocation4], 512  }
  0x24   :  { %611 = vsyncadd [#allocation4], 4294966784 }
  0x25   :  { %612 = dma.done.wait [#allocation7], 512  }
  0x26   :  { %613 = vsyncadd [#allocation7], 4294966784  ;;  %v55_v0 = vlaneseq  ;;  %vm724_vm0 = vcmask 261120   ;;  %vm206_vm1 = vcmask 392192   ;;  %v412_v7 = vld [vmem:[%s718_s1] ss:$0 sm:$0xff]  ;;  %v310_v35 = vstv %s722_s5 }
  0x27   :  { %v407_v8 = vld [vmem:[%s717_s0] ss:$0 sm:$0xff]  ;;  %v620_v11 = vmov 1.0|1.0   ;;  %v101_v12 = vld [vmem:[#allocation3 + $0x8] sm:$0xff]  ;;  %v102_v13 = vld [vmem:[#allocation3 + $0x10] sm:$0xff] }
  0x28   :  { %v56_v1 = vshrl.u32 %v55_v0, 7  ;;  %v100_v9 = vld [vmem:[#allocation3] sm:$0xff]  ;;  %v203_v14 = vld [vmem:[#allocation6 + $0x8] sm:$0xff]  ;;  %v103_v15 = vld [vmem:[#allocation3 + $0x18] sm:$0xff]  ;;  %v621_v18 = vmov 0.0|0.0   ;;  %v623_v19 = vmov 0.0  }
  0x29   :  { %470 = vmatprep.mubr.msk.f32.mxu0 %vm724_vm0, %v100_v9  ;;  %v202_v10 = vld [vmem:[#allocation6] sm:$0xff]  ;;  %v204_v16 = vld [vmem:[#allocation6 + $0x10] sm:$0xff]  ;;  %v205_v17 = vld [vmem:[#allocation6 + $0x18] sm:$0xff]  ;;  %s624_s27 = smov [#allocation8]  }
  0x2a   :  { %v57_v2 = vadd.s32 8, %v56_v1  ;;  %v58_v3 = vadd.s32 16, %v56_v1  ;;  %v59_v4 = vadd.s32 24, %v56_v1  ;;  %v76_v5 = vadd.s32 32, %v56_v1  ;;  %488 = vmatprep.mubr.msk.f32.mxu1 %vm206_vm1, %v202_v10  ;;  %v308_v34 = vld [vmem:[%s721_s4] sm:$0x1] }
  0x2b   :  { %v77_v6 = vadd.s32 40, %v56_v1  ;;  %vm82_vm2 = vcmp.eq.s32.totalorder %v56_v1, %v412_v7  ;;  %vm64_vm4 = vcmp.eq.s32.totalorder %v56_v1, %v407_v8  ;;  %s397_s28 = sshll.u32 %s624_s27, 4  ;;  %s398_s28 = int_to_ptr.vmem [resolvable:$true] %s397_s28 }
  0x2c   :  { %vm83_vm3 = vcmp.eq.s32.totalorder %v57_v2, %v412_v7  ;;  %vm65_vm5 = vcmp.eq.s32.totalorder %v57_v2, %v407_v8  ;;  %vm84_vm7 = vcmp.eq.s32.totalorder %v58_v3, %v412_v7  ;;  %vm85_vm8 = vcmp.eq.s32.totalorder %v59_v4, %v412_v7  ;;  %s588_s4 = scalar_lea.vmem %s398_s28, 16  ;;  %s592_s29 = scalar_lea.vmem %s398_s28, 32 }
  0x2d   :  { %vm513_vm6 = vmpackc.low %vm83_vm3, %vm82_vm2  ;;  %vm66_vm9 = vcmp.eq.s32.totalorder %v58_v3, %v407_v8  ;;  %vm67_vm10 = vcmp.eq.s32.totalorder %v59_v4, %v407_v8  ;;  %vm86_vm12 = vcmp.eq.s32.totalorder %v76_v5, %v412_v7  ;;  %vm87_vm13 = vcmp.eq.s32.totalorder %v77_v6, %v412_v7  ;;  %p589_p2 = scmp.ne.s32.totalorder %s398_s28, %s588_s4  ;;  %p593_p3 = scmp.lt.s32.totalorder %s398_s28, %s398_s28 }
  0x2e   :  { %514 = vmatprep.subr.msk.bf16.mxu1 %vm513_vm6, %v620_v11  ;;  %vm505_vm11 = vmpackc.low %vm65_vm5, %vm64_vm4  ;;  %vm725_vm2 = vcmask 261120   ;;  %vm622_vm5 = vmmov 0   ;;  %p594_p4 = scmp.lt.s32.totalorder %s592_s29, %s588_s4 }
  0x2f   :  { %516 = vmatpush3.bf16.msk.msra.mxu1 %vm513_vm6, %v620_v11  ;;  %506 = vmatprep.subr.msk.bf16.mxu0 %vm505_vm11, %v620_v11  ;;  %vm517_vm14 = vmpackc.low %vm85_vm8, %vm84_vm7 }
  0x30   :  { %508 = vmatpush3.bf16.msk.msra.mxu0 %vm505_vm11, %v620_v11  ;;  %518 = vmatprep.subr.msk.bf16.mxu1 %vm517_vm14, %v620_v11  ;;  %vm509_vm15 = vmpackc.low %vm67_vm10, %vm66_vm9  ;;  %p595_p5 = por %p594_p4, %p593_p3 }
  0x31   :  { %510 = vmatprep.subr.msk.bf16.mxu0 %vm509_vm15, %v620_v11  ;;  %vm521_vm0 = vmpackc.low %vm87_vm13, %vm86_vm12 }
  0x32   :  { %vm726_vm3 = vmmov %vm725_vm2  ;;  %p596_p6 = pnand %p595_p5, %p589_p2 }
  0x33   :  { %520 = vmatpush3.bf16.msk.msra.mxu1 %vm517_vm14, %v620_v11  ;;  %vm727_vm4 = vmmov %vm725_vm2 }
  0x34   :  { %512 = vmatpush3.bf16.msk.msra.mxu0 %vm509_vm15, %v620_v11  ;;  %522 = vmatprep.subr.msk.bf16.mxu1 %vm521_vm0, %v620_v11 }
  0x35   :  { %525 = vmatprep.subr.bf16.mxu0 %v621_v18 }
  0x37   :  { %524 = vmatpush3.bf16.msk.msra.mxu1 %vm521_vm0, %v620_v11  ;;  %471 = vmatmul.mubr.msk.f32.vlgmr.msra.gmra.mrb[0].mxu0 %vm725_vm2, %v101_v12  ;;  %vm728_vm0 = vmmov %vm725_vm2 }
  0x38   :  { %473 = vmatprep.mubr.msk.f32.mxu0 %vm726_vm3, %v102_v13 }
  0x3a   :  { %489 = vmatmul.mubr.msk.f32.vlgmr.msra.gmra.mrb[0].mxu1 %vm206_vm1, %v203_v14 }
  0x3b   :  { %474 = vmatmul.mubr.msk.f32.gmra.mrb[2].mxu0 %vm727_vm4, %v103_v15  ;;  %491 = vmatprep.mubr.msk.f32.mxu1 %vm206_vm1, %v204_v16 }
  0x3c   :  { %502 = vmatprep.mubr.msk.f32.mxu0 %vm622_vm5, %v623_v19 }
  0x3e   :  { %492 = vmatmul.mubr.msk.f32.gmra.mrb[2].mxu1 %vm206_vm1, %v205_v17 }
 0x10a   :  { %v472_v20 = vpop.f32.mrb[0].mxu0 }
 0x10b   :  { %v183_v21 = vpop.f32.mrb[1].mxu0 }
 0x10d   :  { %v490_v22 = vpop.f32.mrb[0].mxu1 }
 0x10e   :  { %v305_v23 = vmul.f32 %v490_v22, %v472_v20  ;;  %v285_v24 = vpop.f32.mrb[1].mxu1  ;;  %v475_v25 = vpop.f32.mrb[2].mxu0 }
 0x10f   :  { %v304_v26 = vmul.f32 %v285_v24, %v183_v21  ;;  %v193_v27 = vpop.f32.mrb[3].mxu0 }
 0x111   :  { %v526_v28 = vpack.c.bf16 %v305_v23, %v304_v26  ;;  %v493_v29 = vpop.f32.mrb[2].mxu1 }
 0x112   :  { %v307_v30 = vmul.f32 %v493_v29, %v475_v25  ;;  %v295_v31 = vpop.f32.mrb[3].mxu1 }
 0x113   :  { %v306_v32 = vmul.f32 %v295_v31, %v193_v27  ;;  %527 = vmatpush3.bf16.msra.mxu0 %v526_v28 }
 0x114   :  { %528 = vmatprep.subr.bf16.mxu0 %v621_v18 }
 0x115   :  { %v529_v33 = vpack.c.bf16 %v307_v30, %v306_v32 }
 0x117   :  { %530 = vmatpush3.bf16.msra.mxu0 %v529_v33 }
 0x11a   :  { %503 = vmatmul.mubr.msk.f32.vlgmr.msra.gmra.mrb[4].mxu0 %vm728_vm0, %v308_v34 }
 0x1ed   :  { %v380_v36 = vpop.f32.mrb[4].mxu0 }
 0x1ee   :  { %v381_v37 = vadd.f32 %v380_v36, %v310_v35  ;;  %v504_v38 = vpop.f32.mrb[5].mxu0 }
 0x1f0   :  { %v438_v39 = vmul.f32 -1.442695, %v381_v37 }
 0x1f2   :  { %540 = vpow2.f32 %v438_v39 }
 0x1fc   :  { %v541_v40 = vpop.eup %540 }
 0x1fd   :  { %v387_v41 = vadd.f32 1.0, %v541_v40 }
 0x1ff   :  { %542 = vrcp.f32 %v387_v41 }
 0x209   :  { %v543_v42 = vpop.eup %542 }
 0x20a   :  { %390 = vst [vmem:[#allocation8] sm:$0x1] %v543_v42 }
 0x20b   :  { %599 = shalt.err (!%p596_p6)
}
 0x20c   :  { %s600_s7 = scalar_lea.hbm %s723_s6, 16 }
 0x20d   :  { %p601_p7 = scmp.ne.s32.totalorder %s723_s6, %s600_s7  ;;  %p604_p8 = scmp.lt.u32.totalorder %s600_s7, %s723_s6 }
 0x20f   :  { %p606_p9 = pnand %p604_p8, %p601_p7 }
 0x211   :  { %609 = shalt.err (!%p606_p9)
}
 0x212   :  { %400 = dma.vmem_to_hbm [thread:$0]  %s398_s28, 16, %s723_s6, [#allocation5]  }
 0x213   :  { %614 = dma.done.wait [#allocation5], 16  }
 0x214   :  { %615 = vsyncadd [#allocation5], 4294967280 }
 0x215   :  { %404 = vsyncpa [#allocation4], 1 }
 0x216   :  { %405 = vsyncpa [#allocation7], 1 }
 0x217   :  { %406 = vsyncpa [#allocation5], 1 }

</bundles_post_ra>
